<compile_context>
chip_gen: v5e
topology: v5e:2x2
jax: 0.10.0
libtpu: 0.0.40
codegen_flags: <defaults>
</compile_context>

<pallas_src>
import jax
import jax.numpy as jnp
from jax.experimental import pallas as pl
from jax.experimental.pallas import tpu as pltpu


def _refine_kernel(x_ref, w_ref, b_ref, o_ref):
    # x block: (1, C, T_blk, HW); keep it in the activation dtype.
    xb = x_ref[0]                                           # (C, T_blk, HW)

    # Per-frame spatial sum: XLU cross-lane reduce — no selector matmul.
    frame_sum = jnp.sum(xb, axis=-1).astype(jnp.float32)    # (C, T_blk)

    # 1x1x1 Conv3d == channel-mixing matmul + bias (1/HW already folded into w).
    z = jnp.dot(w_ref[...], frame_sum,
                preferred_element_type=jnp.float32) + b_ref[...]
    gate = jax.nn.sigmoid(z)                                # (C, T_blk), f32

    # Broadcast each frame's gate over its HW lanes; cast the gate DOWN to the
    # activation dtype instead of upcasting the block-sized x.
    o_ref[0] = xb * gate[:, :, None].astype(o_ref.dtype)


def _block_footprint_bytes(C, t_blk, HW, itemsize):
    # 2x input + 2x output double-buffered blocks (the only block-sized VMEM
    # users); the (C, t_blk) f32 intermediates are negligible but counted.
    return 4 * C * t_blk * HW * itemsize + 2 * C * t_blk * 4


def _pick_t_block(C, T, HW, itemsize, vmem_budget_bytes):
    """Largest T chunk whose total pipelined footprint fits the budget.

    A partial chunk (t_blk < T) must divide T and be a multiple of 8 so the
    second-to-last block dim stays sublane-aligned; t_blk == T (full extent)
    is always legal."""
    if _block_footprint_bytes(C, T, HW, itemsize) <= vmem_budget_bytes:
        return T
    for cand in range(T - 1, 0, -1):
        if (T % cand == 0 and cand % 8 == 0
                and _block_footprint_bytes(C, cand, HW, itemsize) <= vmem_budget_bytes):
            return cand
    # TODO(synk): no sublane-aligned divisor of T fits the budget (e.g. prime T
    # with a huge frame); fall back to the full extent — still correct, relies
    # on the raised vmem_limit_bytes below.
    return T


def refine_pallas(x, weight, bias, *, vmem_budget_bytes=12 * 1024 * 1024):
    """x: [B, C, T, H, W] (PyTorch NCDHW). weight: [C, C]. bias: [C]."""
    B, C, T, H, W = x.shape
    HW = H * W
    itemsize = jnp.dtype(x.dtype).itemsize

    # Free reshape: merge the two trailing contiguous dims (H, W) -> HW.
    x4 = x.reshape(B, C, T, HW)

    t_blk = _pick_t_block(C, T, HW, itemsize, vmem_budget_bytes)
    n_tc = T // t_blk

    # v7x megacore: make sure there are >= 2 parallel blocks when B == 1.
    if B * n_tc < 2 and T > 1:
        for cand in range(T // 2, 0, -1):
            if T % cand == 0 and cand % 8 == 0:
                t_blk, n_tc = cand, T // cand
                break

    # Fold the 1/HW of the mean pool into the conv weight; keep gate math in f32.
    w_scaled = weight.astype(jnp.float32) * (1.0 / HW)
    bias_col = bias.astype(jnp.float32).reshape(C, 1)

    footprint = (_block_footprint_bytes(C, t_blk, HW, itemsize)
                 + C * C * 4 + C * 4)
    vmem_limit = int(min(64 * 1024 * 1024,
                         max(2 * footprint, 16 * 1024 * 1024)))

    out4 = pl.pallas_call(
        _refine_kernel,
        out_shape=jax.ShapeDtypeStruct((B, C, T, HW), x.dtype),
        grid_spec=pltpu.PrefetchScalarGridSpec(
            num_scalar_prefetch=0,
            grid=(B, n_tc),
            in_specs=[
                pl.BlockSpec((1, C, t_blk, HW), lambda b, tc: (b, 0, tc, 0)),  # x stream
                pl.BlockSpec((C, C), lambda b, tc: (0, 0)),                    # conv weight (pre-scaled)
                pl.BlockSpec((C, 1), lambda b, tc: (0, 0)),                    # conv bias
            ],
            out_specs=pl.BlockSpec((1, C, t_blk, HW), lambda b, tc: (b, 0, tc, 0)),
        ),
        compiler_params=pltpu.CompilerParams(
            dimension_semantics=("parallel", "parallel"),
            vmem_limit_bytes=vmem_limit,
        ),
    )(x4, w_scaled, bias_col)

    return out4.reshape(B, C, T, H, W)


def refine_reference(x, weight, bias):
    """Pure-JAX reference matching the PyTorch Refine module."""
    pooled = jnp.mean(x, axis=(3, 4), keepdims=True)                    # (B,C,T,1,1)
    z = jnp.einsum("oc,bcthw->bothw", weight, pooled) + bias.reshape(1, -1, 1, 1, 1)
    gate = jax.nn.sigmoid(z)
    return gate * x


if __name__ == "__main__":
    # Small shapes consistent with the module: dim=C channels, t_length=T frames.
    B, C, T, H, W = 2, 32, 4, 8, 8

    key = jax.random.PRNGKey(0)
    kx, kw, kb = jax.random.split(key, 3)

    x = jax.random.normal(kx, (B, C, T, H, W), dtype=jnp.float32)
    # Deterministic Conv3d(C, C, 1) parameters (kernel squeezed to [C_out, C_in]).
    fan_in = C  # C_in * 1 * 1 * 1
    bound = 1.0 / (fan_in ** 0.5)
    weight = jax.random.uniform(kw, (C, C), minval=-bound, maxval=bound, dtype=jnp.float32)
    bias = jax.random.uniform(kb, (C,), minval=-bound, maxval=bound, dtype=jnp.float32)

    out = jax.block_until_ready(refine_pallas(x, weight, bias))
    ref = jax.block_until_ready(refine_reference(x, weight, bias))

    assert out.shape == x.shape
    assert jnp.allclose(out, ref, atol=1e-5, rtol=1e-5), "mismatch vs reference"
    print("KERNEL_OK")
</pallas_src>

<mosaic_0001>
module attributes {stable_mosaic.version = 11 : i64} {
  func.func @_refine_kernel(%arg0: i32, %arg1: i32, %arg2: memref<1x32x4x64xf32, #tpu.memory_space<vmem>>, %arg3: memref<32x32xf32, #tpu.memory_space<vmem>>, %arg4: memref<32x1xf32, #tpu.memory_space<vmem>>, %arg5: memref<1x32x4x64xf32, #tpu.memory_space<vmem>>) attributes {dimension_semantics = [#tpu.dimension_semantics<parallel>, #tpu.dimension_semantics<parallel>], iteration_bounds = array<i64: 2, 1>, scalar_prefetch = 0 : i64, scratch_operands = 0 : i64, tpu.core_type = #tpu.core_type<tc>, window_params = [{transform_indices = @transform_0, window_bounds = array<i64: 1, 32, 4, 64>}, {pipeline_mode = #tpu.pipeline_mode<synchronous>, transform_indices = @transform_1, window_bounds = array<i64: 32, 32>}, {pipeline_mode = #tpu.pipeline_mode<synchronous>, transform_indices = @transform_2, window_bounds = array<i64: 32, 1>}, {transform_indices = @transform_3, window_bounds = array<i64: 1, 32, 4, 64>}]} {
    %c0 = arith.constant 0 : index
    %c0_0 = arith.constant 0 : index
    %c0_1 = arith.constant 0 : index
    %c0_2 = arith.constant 0 : index
    %0 = vector.load %arg2[%c0, %c0_0, %c0_1, %c0_2] : memref<1x32x4x64xf32, #tpu.memory_space<vmem>>, vector<1x32x4x64xf32>
    %1 = vector.shape_cast %0 : vector<1x32x4x64xf32> to vector<32x4x64xf32>
    %cst = arith.constant dense<0.000000e+00> : vector<32x4xf32>
    %2 = vector.multi_reduction <add>, %1, %cst [2] : vector<32x4x64xf32> to vector<32x4xf32>
    %c0_3 = arith.constant 0 : index
    %c0_4 = arith.constant 0 : index
    %3 = vector.load %arg3[%c0_3, %c0_4] : memref<32x32xf32, #tpu.memory_space<vmem>>, vector<32x32xf32>
    %cst_5 = arith.constant dense<0.000000e+00> : vector<32x4xf32>
    %4 = tpu.matmul %3, %2, %cst_5 {dimension_numbers = #tpu.dot_dimension_numbers<[1], [0], [0], [1], [0, 0, 1, 1], [], []>} : vector<32x32xf32>, vector<32x4xf32>, vector<32x4xf32> -> vector<32x4xf32>
    %c0_6 = arith.constant 0 : index
    %c0_7 = arith.constant 0 : index
    %5 = vector.load %arg4[%c0_6, %c0_7] : memref<32x1xf32, #tpu.memory_space<vmem>>, vector<32x1xf32>
    %6 = vector.broadcast %5 : vector<32x1xf32> to vector<32x4xf32>
    %7 = arith.addf %4, %6 : vector<32x4xf32>
    %8 = arith.negf %7 : vector<32x4xf32>
    %9 = math.exp %8 : vector<32x4xf32>
    %cst_8 = arith.constant 1.000000e+00 : f32
    %10 = vector.broadcast %cst_8 : f32 to vector<32x4xf32>
    %11 = arith.addf %10, %9 : vector<32x4xf32>
    %12 = arith.divf %10, %11 : vector<32x4xf32>
    %13 = vector.shape_cast %12 : vector<32x4xf32> to vector<32x4x1xf32>
    %14 = vector.broadcast %13 : vector<32x4x1xf32> to vector<32x4x64xf32>
    %15 = arith.mulf %1, %14 : vector<32x4x64xf32>
    %c0_9 = arith.constant 0 : index
    %c0_10 = arith.constant 0 : index
    %c0_11 = arith.constant 0 : index
    %c0_12 = arith.constant 0 : index
    %16 = vector.load %arg5[%c0_9, %c0_10, %c0_11, %c0_12] : memref<1x32x4x64xf32, #tpu.memory_space<vmem>>, vector<1x32x4x64xf32>
    %17 = vector.shape_cast %16 : vector<1x32x4x64xf32> to vector<32x4x64xf32>
    %18 = vector.shape_cast %15 : vector<32x4x64xf32> to vector<1x32x4x64xf32>
    tpu.vector_store %arg5[%c0_9, %c0_10, %c0_11, %c0_12], %18 {strides = array<i32>} : memref<1x32x4x64xf32, #tpu.memory_space<vmem>>, vector<1x32x4x64xf32>,
    return
  }
  func.func @transform_0(%arg0: i32, %arg1: i32) -> (i32, i32, i32, i32) {
    %c0_i32 = arith.constant 0 : i32
    %c0_i32_0 = arith.constant 0 : i32
    %c0_i32_1 = arith.constant 0 : i32
    return %arg0, %c0_i32, %arg1, %c0_i32_0 : i32, i32, i32, i32
  }
  func.func @transform_1(%arg0: i32, %arg1: i32) -> (i32, i32) {
    %c0_i32 = arith.constant 0 : i32
    %c0_i32_0 = arith.constant 0 : i32
    %c0_i32_1 = arith.constant 0 : i32
    return %c0_i32, %c0_i32_0 : i32, i32
  }
  func.func @transform_2(%arg0: i32, %arg1: i32) -> (i32, i32) {
    %c0_i32 = arith.constant 0 : i32
    %c0_i32_0 = arith.constant 0 : i32
    %c0_i32_1 = arith.constant 0 : i32
    return %c0_i32, %c0_i32_0 : i32, i32
  }
  func.func @transform_3(%arg0: i32, %arg1: i32) -> (i32, i32, i32, i32) {
    %c0_i32 = arith.constant 0 : i32
    %c0_i32_0 = arith.constant 0 : i32
    %c0_i32_1 = arith.constant 0 : i32
    return %arg0, %c0_i32, %arg1, %c0_i32_0 : i32, i32, i32, i32
  }
}

</mosaic_0001>

<bundles_post_ra>
// kernel: tpu_custom_call.1
= control target key start
LH: loop header
LB: loop body
LE: loop exit
PB: predicated region body
PF: predicated region fallthrough
CT: control target
= control target key end

     0   :  { %8 = vsyncpa [#allocation3], 0  ;;  %s1740_s0 = inlined_call_operand.hbm [shape: f32[2,32,4,64], index: 0, kind: input, shape index: {}]   ;;  %s1741_s1 = inlined_call_operand.vmem [shape: f32[32,32], index: 1, kind: input, shape index: {}]   ;;  %s1742_s2 = inlined_call_operand.vmem [shape: f32[32,1], index: 2, kind: input, shape index: {}]   ;;  %s1743_s3 = inlined_call_operand.hbm [shape: f32[2,32,4,64], index: 3, kind: output, shape index: {}]  }
   0x1   :  { %10 = vsyncpa [#allocation3 + $0x1], 0 }
   0x2   :  { %11 = vsyncpa [#allocation4], 0 }
   0x3   :  { %13 = vsyncpa [#allocation4 + $0x1], 0  ;;  %s1243_s12 = smov 0   ;;  %s1245_s13 = smov 0  }
   0x4   :  { %s1247_s14 = smov 0   ;;  %s1249_s15 = smov 0  }
   0x5   :  { %s1251_s16 = smov 0   ;;  %s1253_s17 = smov 0  }
   0x6 LB: > { %s978_s18 = sadd.s32 4294967295, %s1216_s17   ;;  %s979_s19 = sadd.s32 4294967294, %s1216_s17   ;;  %s1216_s17 = sphi %s1253_s17, %s19_s17   ;;  %s1212_s16 = sphi %s1251_s16, %s1752_s16   ;;  %s1208_s15 = sphi %s1249_s15, %s1751_s15   ;;  %s1204_s14 = sphi %s1247_s14, %s1750_s14   ;;  %s1200_s13 = sphi %s1245_s13, %s1749_s13   ;;  %s1196_s12 = sphi %s1243_s12, %s1748_s12  }
   0x7   : > { %s31_s20 = sadd.s32 1, %s1212_s16  ;;  %s40_s21 = sadd.s32 1, %s1204_s14 }
   0x8   : > { %p33_p0 = scmp.ge.s32.totalorder %s31_s20, 2  ;;  %p47_p1 = scmp.ne.s32.totalorder %s1204_s14, %s1200_s13 }
   0x9   : > { %p48_p2 = scmp.eq.s32.totalorder %s1216_s17, 0  ;;  %p53_p3 = scmp.ne.s32.totalorder %s1200_s13, %s1196_s12 }
   0xa   : > { %s1754_s20 = smov (%p33_p0, %s31_s20), 0  ;;  %p54_p5 = scmp.eq.s32.totalorder %s978_s18, 0 }
   0xb   : > { %p1284_p4 = por %p48_p2, %p47_p1  ;;  %s35_s23 = ssub.s32 %s1212_s16, %s1754_s20 }
   0xc   : > { %p121_p6 = scmp.eq.s32.totalorder %s978_s18, 1  ;;  %p38_p7 = scmp.eq.s32.totalorder %s35_s23, 0 }
   0xd   : > { %p1290_p8 = por %p54_p5, %p53_p3  ;;  %p127_p10 = scmp.eq.s32.totalorder %s979_s19, 1 }
   0xe   : > { %p1294_p9 = por %p121_p6, %p47_p1  ;;  %p981_p12 = scmp.ge.s32.totalorder %s1216_s17, 2 }
   0xf   : > { %s1299_s26 = scalar_select %p38_p7, %s1204_s14, %s40_s21  }
  0x10   : > { %p1301_p11 = por %p127_p10, %p53_p3  ;;  %p1027_p13 = scmp.lt.s32.totalorder %s1216_s17, 2 }
  0x11   : > { %s153_s28 = sand.u32 1, %s1204_s14   ;;  %s1001_s30 = sshll.u32 %s1212_s16, 7 }
  0x12   : > { %s982_s29 = sshll.u32 %s153_s28, 7  ;;  %s163_s6 = scalar_lea.hbm %s1740_s0, %s1001_s30 }
  0x13   : > { %s157_s7 = scalar_lea.vmem [#allocation2], %s982_s29  ;;  %s164_s9 = sshll.u32 %s163_s6, 4  ;;  %s165_s9 = int_to_ptr.hbm [resolvable:$true] %s164_s9 }
  0x14   : > { %s166_s8 = sshll.u32 %s157_s7, 4  ;;  %p1020_p0 = pnand %p1027_p13, %p1284_p4  ;;  %s167_s8 = int_to_ptr.vmem [resolvable:$true] %s166_s8 }
  0x15   : > { %p985_p1 = scmp.ge.s32.totalorder %s1216_s17, 1  ;;  %s154_s10 = scalar_lea.sflag [#allocation3], %s153_s28 }
  0x16   : > { %s1218_s11 = smov 64   ;;  %s1219_s18 = smov 4  }
  0x17   : > { %1022 = dma.hbm_to_vmem [thread:$0]  (!%p1020_p0), %s165_s9, 2048, %s167_s8, %s154_s10, %s1218_s11, %s1218_s11, %s1219_s18  }
  0x18   : > { %p174_p2 = scmp.lt.s32.totalorder %s1216_s17, 3 }
  0x1a   : > { %p175_p3 = pnand %p985_p1, %p174_p2 }
  0x1b   : > { %s1317_s19 = sand.u32 (!%p175_p3), 1, %s1200_s13  }
  0x1c   : > { %178 = sbr.rel (%p175_p3) target bundleno = 602 (0x25a), region = 32  ;;  %s986_s21 = sshll.u32 (!%p175_p3), %s1317_s19, 7 }
  0x1d   : > { %s181_s23 = scalar_lea.sflag (!%p175_p3), [#allocation3], %s1317_s19  ;;  %s1323_s22 = scalar_lea.vmem (!%p175_p3), [#allocation2], %s986_s21 }
  0x21   : > { %1187 = dma.done.wait (%p1290_p8), %s181_s23, 2048  }
  0x22   : > { %1189 = vsyncadd (%p1290_p8), %s181_s23, 4294965248  ;;  %vm240_vm0 = vcmask 519168   ;;  %v1330_v0 = vld [vmem:[%s1323_s22 + $0x10] sm:$0xf]  ;;  %v1333_v1 = vld [vmem:[%s1323_s22 + $0x8] sm:$0xf] }
  0x23   : > { %v1336_v2 = vld [vmem:[%s1323_s22] sm:$0xf]  ;;  %v253_v3 = vsel %vm240_vm0, %v1330_v0, 0.0  ;;  %v247_v4 = vsel %vm240_vm0, %v1333_v1, 0.0  ;;  %v1345_v6 = vld [vmem:[%s1323_s22 + $0x14] sm:$0xf] }
  0x24   : > { %v241_v5 = vsel %vm240_vm0, %v1336_v2, 0.0  ;;  %254 = vadd.xlane.f32.xlu2 %v253_v3  ;;  %248 = vadd.xlane.f32.xlu1 %v247_v4  ;;  %v1348_v7 = vld [vmem:[%s1323_s22 + $0xc] sm:$0xf]  ;;  %v1351_v8 = vld [vmem:[%s1323_s22 + $0x4] sm:$0xf]  ;;  %v256_v9 = vsel %vm240_vm0, %v1345_v6, 0.0 }
  0x25   : > { %242 = vadd.xlane.f32.xlu0 %v241_v5  ;;  %v250_v10 = vsel %vm240_vm0, %v1348_v7, 0.0  ;;  %v244_v11 = vsel %vm240_vm0, %v1351_v8, 0.0  ;;  %v1360_v12 = vld [vmem:[%s1323_s22 + $0x20] sm:$0xf]  ;;  %v1363_v13 = vld [vmem:[%s1323_s22 + $0x1c] sm:$0xf] }
  0x26   : > { %v1366_v14 = vld [vmem:[%s1323_s22 + $0x18] sm:$0xf]  ;;  %v265_v15 = vsel %vm240_vm0, %v1360_v12, 0.0  ;;  %v262_v16 = vsel %vm240_vm0, %v1363_v13, 0.0  ;;  %v1375_v18 = vld [vmem:[%s1323_s22 + $0x2c] sm:$0xf] }
  0x27   : > { %v259_v17 = vsel %vm240_vm0, %v1366_v14, 0.0  ;;  %v1378_v19 = vld [vmem:[%s1323_s22 + $0x28] sm:$0xf]  ;;  %v1381_v20 = vld [vmem:[%s1323_s22 + $0x24] sm:$0xf]  ;;  %v274_v21 = vsel %vm240_vm0, %v1375_v18, 0.0 }
  0x28   : > { %v271_v22 = vsel %vm240_vm0, %v1378_v19, 0.0  ;;  %v268_v23 = vsel %vm240_vm0, %v1381_v20, 0.0  ;;  %v1390_v24 = vld [vmem:[%s1323_s22 + $0x38] sm:$0xf]  ;;  %v1393_v25 = vld [vmem:[%s1323_s22 + $0x34] sm:$0xf] }
  0x29   : > { %v1396_v26 = vld [vmem:[%s1323_s22 + $0x30] sm:$0xf]  ;;  %v283_v27 = vsel %vm240_vm0, %v1390_v24, 0.0  ;;  %v280_v28 = vsel %vm240_vm0, %v1393_v25, 0.0  ;;  %v1405_v30 = vld [vmem:[%s1323_s22 + $0x44] sm:$0xf] }
  0x2a   : > { %v277_v29 = vsel %vm240_vm0, %v1396_v26, 0.0  ;;  %v1408_v31 = vld [vmem:[%s1323_s22 + $0x40] sm:$0xf]  ;;  %v1411_v32 = vld [vmem:[%s1323_s22 + $0x3c] sm:$0xf]  ;;  %v292_v33 = vsel %vm240_vm0, %v1405_v30, 0.0 }
  0x2b   : > { %v289_v34 = vsel %vm240_vm0, %v1408_v31, 0.0  ;;  %v286_v35 = vsel %vm240_vm0, %v1411_v32, 0.0  ;;  %v1420_v36 = vld [vmem:[%s1323_s22 + $0x60] sm:$0xf]  ;;  %v1423_v37 = vld [vmem:[%s1323_s22 + $0x4c] sm:$0xf] }
  0x2c   : > { %257 = vadd.xlane.f32.xlu2 %v256_v9  ;;  %251 = vadd.xlane.f32.xlu1 %v250_v10  ;;  %v1426_v38 = vld [vmem:[%s1323_s22 + $0x48] sm:$0xf]  ;;  %v313_v39 = vsel %vm240_vm0, %v1420_v36, 0.0  ;;  %v298_v40 = vsel %vm240_vm0, %v1423_v37, 0.0  ;;  %v1435_v42 = vld [vmem:[%s1323_s22 + $0x6c] sm:$0xf]  ;;  %v397_v9 = vlaneseq }
  0x2d   : > { %245 = vadd.xlane.f32.xlu0 %v244_v11  ;;  %v295_v41 = vsel %vm240_vm0, %v1426_v38, 0.0  ;;  %v1438_v43 = vld [vmem:[%s1323_s22 + $0x68] sm:$0xf]  ;;  %v1441_v44 = vld [vmem:[%s1323_s22 + $0x64] sm:$0xf]  ;;  %v322_v45 = vsel %vm240_vm0, %v1435_v42, 0.0 }
  0x2e   : > { %v319_v46 = vsel %vm240_vm0, %v1438_v43, 0.0  ;;  %v316_v47 = vsel %vm240_vm0, %v1441_v44, 0.0  ;;  %v1450_v48 = vld [vmem:[%s1323_s22 + $0x50] sm:$0xf]  ;;  %v1453_v49 = vld [vmem:[%s1323_s22 + $0x74] sm:$0xf] }
  0x2f   : > { %v1456_v50 = vld [vmem:[%s1323_s22 + $0x70] sm:$0xf]  ;;  %v301_v51 = vsel %vm240_vm0, %v1450_v48, 0.0  ;;  %v328_v52 = vsel %vm240_vm0, %v1453_v49, 0.0  ;;  %v1465_v54 = vld [vmem:[%s1323_s22 + $0x54] sm:$0xf] }
  0x30   : > { %v325_v53 = vsel %vm240_vm0, %v1456_v50, 0.0  ;;  %v1468_v55 = vld [vmem:[%s1323_s22 + $0x7c] sm:$0xf]  ;;  %v1471_v56 = vld [vmem:[%s1323_s22 + $0x78] sm:$0xf]  ;;  %v304_v57 = vsel %vm240_vm0, %v1465_v54, 0.0 }
  0x31   : > { %v334_v58 = vsel %vm240_vm0, %v1468_v55, 0.0  ;;  %v331_v59 = vsel %vm240_vm0, %v1471_v56, 0.0  ;;  %v1480_v60 = vld [vmem:[%s1323_s22 + $0x5c] sm:$0xf]  ;;  %v1483_v61 = vld [vmem:[%s1323_s22 + $0x58] sm:$0xf] }
  0x32   : > { %v310_v62 = vsel %vm240_vm0, %v1480_v60, 0.0  ;;  %v307_v63 = vsel %vm240_vm0, %v1483_v61, 0.0  ;;  %v1490_v10 = vand.u32 127, %v397_v9  ;;  %vm431_vm1 = vcmask 1041409   ;;  %s1604_s28 = scalar_lea.vmem [#allocation5], %s986_s21  ;;  %s1002_s21 = sshll.u32 %s1208_s15, 7 }
  0x33   : > { %vm433_vm2 = vcmask 1042434   ;;  %vm435_vm3 = vcmask 1043459   ;;  %vm437_vm4 = vcmask 1044484   ;;  %vm439_vm5 = vcmask 1045509   ;;  %s889_s4 = scalar_lea.hbm %s1743_s3, %s1002_s21  ;;  %s890_s5 = sshll.u32 %s1604_s28, 4  ;;  %s891_s5 = int_to_ptr.vmem [resolvable:$true] %s890_s5 }
  0x34   : > { %266 = vadd.xlane.f32.xlu2 %v265_v15  ;;  %263 = vadd.xlane.f32.xlu1 %v262_v16  ;;  %vm441_vm6 = vcmask 1046534   ;;  %vm443_vm7 = vcmask 1047559   ;;  %vm470_vm8 = vcmask 261120   ;;  %s892_s6 = sshll.u32 %s889_s4, 4  ;;  %s877_s15 = scalar_lea.sflag [#allocation4], %s1317_s19  ;;  %s893_s6 = int_to_ptr.hbm [resolvable:$true] %s892_s6 }
  0x35   : > { %260 = vadd.xlane.f32.xlu0 %v259_v17  ;;  %s1148_s7 = sshra.s32 %s893_s6, 4  ;;  %s1154_s11 = scalar_lea.hbm %s1743_s3, 256  ;;  %s1149_s7 = int_to_ptr.hbm [resolvable:$true] %s1148_s7 }
  0x36   : > { %s1150_s8 = scalar_lea.hbm %s1149_s7, 128  ;;  %p1155_p7 = scmp.lt.s32.totalorder %s1149_s7, %s1743_s3 }
  0x37   : > { %p1151_p4 = scmp.ne.s32.totalorder %s1149_s7, %s1150_s8  ;;  %p1156_p8 = scmp.lt.s32.totalorder %s1154_s11, %s1150_s8 }
  0x39   : > { %p1152_p5 = pnand %p1151_p4, %p1294_p9  ;;  %p1157_p10 = por %p1156_p8, %p1155_p7 }
  0x3b   : > { %p1153_p6 = pneg %p1152_p5 }
  0x3c   : > { %275 = vadd.xlane.f32.xlu2 %v274_v21  ;;  %272 = vadd.xlane.f32.xlu1 %v271_v22 }
  0x3d   : > { %269 = vadd.xlane.f32.xlu0 %v268_v23  ;;  %p1158_p13 = pnand %p1157_p10, %p1153_p6 }
  0x44   : > { %284 = vadd.xlane.f32.xlu2 %v283_v27  ;;  %281 = vadd.xlane.f32.xlu1 %v280_v28 }
  0x45   : > { %278 = vadd.xlane.f32.xlu0 %v277_v29 }
  0x4c   : > { %293 = vadd.xlane.f32.xlu2 %v292_v33  ;;  %290 = vadd.xlane.f32.xlu1 %v289_v34 }
  0x4d   : > { %287 = vadd.xlane.f32.xlu0 %v286_v35 }
  0x54   : > { %314 = vadd.xlane.f32.xlu2 %v313_v39  ;;  %299 = vadd.xlane.f32.xlu1 %v298_v40 }
  0x55   : > { %296 = vadd.xlane.f32.xlu0 %v295_v41 }
  0x5c   : > { %323 = vadd.xlane.f32.xlu2 %v322_v45  ;;  %320 = vadd.xlane.f32.xlu1 %v319_v46 }
  0x5d   : > { %317 = vadd.xlane.f32.xlu0 %v316_v47 }
  0x64   : > { %302 = vadd.xlane.f32.xlu2 %v301_v51  ;;  %329 = vadd.xlane.f32.xlu1 %v328_v52 }
  0x65   : > { %326 = vadd.xlane.f32.xlu0 %v325_v53 }
  0x6c   : > { %305 = vadd.xlane.f32.xlu1 %v304_v57  ;;  %335 = vadd.xlane.f32.xlu2 %v334_v58 }
  0x6d   : > { %332 = vadd.xlane.f32.xlu0 %v331_v59 }
  0x74   : > { %311 = vadd.xlane.f32.xlu1 %v310_v62 }
  0x75   : > { %308 = vadd.xlane.f32.xlu0 %v307_v63 }
  0x97   : > { %v255_v3 = vpop.xlane.xlu2 %254  ;;  %v249_v4 = vpop.xlane.xlu1 %248 }
  0x98   : > { %v243_v5 = vpop.xlane.xlu0 %242  ;;  %v401_v23 = vperm.slane %v249_v4, %v1490_v10  ;;  %v403_v29 = vperm.slane %v255_v3, %v1490_v10 }
  0x99   : > { %v399_v17 = vperm.slane %v243_v5, %v1490_v10 }
  0x9f   : > { %v258_v11 = vpop.xlane.xlu2 %257  ;;  %v252_v15 = vpop.xlane.xlu1 %251 }
  0xa0   : > { %v246_v16 = vpop.xlane.xlu0 %245  ;;  %v402_v21 = vperm.slane %v252_v15, %v1490_v10  ;;  %v404_v27 = vperm.slane %v258_v11, %v1490_v10 }
  0xa1   : > { %v400_v22 = vperm.slane %v246_v16, %v1490_v10 }
  0xa3   : > { %v432_v28 = vsel %vm431_vm1, %v400_v22, %v399_v17 }
  0xa4   : > { %v434_v33 = vsel %vm433_vm2, %v401_v23, %v432_v28  ;;  %v342_v28 = vld [vmem:[%s1742_s2 + $0x8] sm:$0xff] }
  0xa5   : > { %v436_v34 = vsel %vm435_vm3, %v402_v21, %v434_v33  ;;  %v1220_v33 = vmov 0  }
  0xa6   : > { %v438_v35 = vsel %vm437_vm4, %v403_v29, %v436_v34  ;;  %v341_v29 = vld [vmem:[%s1742_s2] sm:$0xff]  ;;  %1083 = vset.pattern.permute.xlu0 %v1220_v33  ;;  %1082 = vset.pattern.permute.xlu2 %v1220_v33  ;;  %v343_v34 = vld [vmem:[%s1742_s2 + $0x10] sm:$0xff] }
  0xa7   : > { %v267_v39 = vpop.xlane.xlu2 %266  ;;  %v264_v40 = vpop.xlane.xlu1 %263  ;;  %v440_v41 = vsel %vm439_vm5, %v404_v27, %v438_v35  ;;  %352 = vperm.xlu0 %1083, %v342_v28   ;;  %347 = vperm.xlu2 %1082, %v341_v29  }
  0xa8   : > { %v406_v45 = vperm.slane %v264_v40, %v1490_v10  ;;  %v261_v46 = vpop.xlane.xlu0 %260  ;;  %1084 = vset.pattern.permute.xlu1 %v1220_v33  ;;  %v407_v28 = vperm.slane %v267_v39, %v1490_v10 }
  0xa9   : > { %v405_v47 = vperm.slane %v261_v46, %v1490_v10  ;;  %357 = vperm.xlu1 %1084, %v343_v34  }
  0xab   : > { %v442_v51 = vsel %vm441_vm6, %v405_v47, %v440_v41 }
  0xac   : > { %v1507_v52 = vsel %vm443_vm7, %v406_v45, %v442_v51 }
  0xaf   : > { %v1509_v53 = vpop.xlane.xlu2 %275  ;;  %v273_v57 = vpop.xlane.xlu1 %272 }
  0xb0   : > { %v270_v58 = vpop.xlane.xlu0 %269 }
  0xb7   : > { %v1511_v59 = vpop.xlane.xlu2 %284  ;;  %v1513_v62 = vpop.xlane.xlu1 %281 }
  0xb8   : > { %v1515_v63 = vpop.xlane.xlu0 %278 }
  0xbf   : > { %v294_v3 = vpop.xlane.xlu2 %293  ;;  %v291_v4 = vpop.xlane.xlu1 %290 }
  0xc0   : > { %v1517_v5 = vpop.xlane.xlu0 %287 }
  0xc7   : > { %v315_v11 = vpop.xlane.xlu2 %314  ;;  %v1519_v15 = vpop.xlane.xlu1 %299 }
  0xc8   : > { %v297_v16 = vpop.xlane.xlu0 %296  ;;  %v423_v23 = vperm.slane %v315_v11, %v1490_v10 }
  0xcf   : > { %v324_v17 = vpop.xlane.xlu2 %323  ;;  %v321_v21 = vpop.xlane.xlu1 %320 }
  0xd0   : > { %v318_v22 = vpop.xlane.xlu0 %317  ;;  %v425_v35 = vperm.slane %v321_v21, %v1490_v10  ;;  %v426_v47 = vperm.slane %v324_v17, %v1490_v10  ;;  %v408_v21 = vperm.slane %v270_v58, %v1490_v10 }
  0xd1   : > { %v424_v27 = vperm.slane %v318_v22, %v1490_v10  ;;  %v344_v22 = vld [vmem:[%s1742_s2 + $0x18] sm:$0xff] }
  0xd2   : > { %362 = vperm.xlu2 %1082, %v344_v22   ;;  %v411_v22 = vperm.slane %v1515_v63, %v1490_v10 }
  0xd3   : > { %v459_v45 = vsel %vm431_vm1, %v424_v27, %v423_v23  ;;  %v409_v27 = vperm.slane %v273_v57, %v1490_v10  ;;  %v410_v57 = vperm.slane %v1509_v53, %v1490_v10 }
  0xd4   : > { %v460_v51 = vsel %vm433_vm2, %v425_v35, %v459_v45  ;;  %v445_v35 = vsel %vm431_vm1, %v408_v21, %v407_v28  ;;  %v416_v45 = vperm.slane %v294_v3, %v1490_v10  ;;  %v418_v28 = vperm.slane %v1519_v15, %v1490_v10 }
  0xd5   : > { %v461_v23 = vsel %vm435_vm3, %v426_v47, %v460_v51 }
  0xd7   : > { %v303_v40 = vpop.xlane.xlu2 %302  ;;  %v330_v41 = vpop.xlane.xlu1 %329 }
  0xd8   : > { %v327_v46 = vpop.xlane.xlu0 %326  ;;  %v428_v29 = vperm.slane %v330_v41, %v1490_v10  ;;  %v417_v41 = vperm.slane %v297_v16, %v1490_v10  ;;  %v419_v53 = vperm.slane %v303_v40, %v1490_v10  ;;  %v413_v40 = vperm.slane %v1511_v59, %v1490_v10 }
  0xd9   : > { %v427_v11 = vperm.slane %v327_v46, %v1490_v10  ;;  %v415_v46 = vperm.slane %v291_v4, %v1490_v10 }
  0xdb   : > { %v462_v17 = vsel %vm437_vm4, %v427_v11, %v461_v23  ;;  %v446_v11 = vsel %vm433_vm2, %v409_v27, %v445_v35  ;;  %v452_v4 = vsel %vm431_vm1, %v416_v45, %v415_v46 }
  0xdc   : > { %v463_v51 = vsel %vm439_vm5, %v428_v29, %v462_v17  ;;  %v453_v21 = vsel %vm433_vm2, %v417_v41, %v452_v4  ;;  %v412_v29 = vperm.slane %v1513_v62, %v1490_v10  ;;  %v447_v63 = vsel %vm435_vm3, %v410_v57, %v446_v11  ;;  %v338_v57 = vld [vmem:[%s1741_s1 + $0x8] sm:$0xff] }
  0xdd   : > { %v448_v27 = vsel %vm437_vm4, %v411_v22, %v447_v63  ;;  %v454_v17 = vsel %vm435_vm3, %v418_v28, %v453_v21  ;;  %v590_v11 = vshrl.u32 %v397_v9, 7 }
  0xde   : > { %v455_v45 = vsel %vm437_vm4, %v419_v53, %v454_v17  ;;  %v449_v46 = vsel %vm439_vm5, %v412_v29, %v448_v27 }
  0xdf   : > { %v306_v33 = vpop.xlane.xlu1 %305  ;;  %v336_v34 = vpop.xlane.xlu2 %335  ;;  %1085 = vset.pattern.permute.xlu2 %v590_v11  ;;  %1086 = vset.pattern.permute.xlu1 %v590_v11 }
  0xe0   : > { %v333_v39 = vpop.xlane.xlu0 %332  ;;  %v430_v58 = vperm.slane %v336_v34, %v1490_v10  ;;  %v420_v23 = vperm.slane %v306_v33, %v1490_v10  ;;  %v414_v33 = vperm.slane %v1517_v5, %v1490_v10  ;;  %v340_v5 = vld [vmem:[%s1741_s1 + $0x18] sm:$0xff]  ;;  %1087 = vset.pattern.permute.xlu0 %v590_v11 }
  0xe1   : > { %v429_v47 = vperm.slane %v333_v39, %v1490_v10 }
  0xe2   : > { %v456_v39 = vsel %vm439_vm5, %v420_v23, %v455_v45 }
  0xe3   : > { %v464_v3 = vsel %vm441_vm6, %v429_v47, %v463_v51  ;;  %v450_v47 = vsel %vm441_vm6, %v413_v40, %v449_v46  ;;  %v339_v51 = vld [vmem:[%s1741_s1 + $0x10] sm:$0xff] }
  0xe4   : > { %v465_v16 = vsel %vm443_vm7, %v430_v58, %v464_v3  ;;  %v451_v59 = vsel %vm443_vm7, %v414_v33, %v450_v47 }
  0xe5   : > { %495 = vmatpush.msra.mxu0 %v465_v16  ;;  %1003 = vmatpush.msra.mxu1 %v465_v16 }
  0xe6   : > { %1004 = vmatpush.msra.mxu2 %v465_v16  ;;  %1005 = vmatpush.msra.mxu3 %v465_v16 }
  0xe7   : > { %v312_v15 = vpop.xlane.xlu1 %311 }
  0xe8   : > { %v309_v34 = vpop.xlane.xlu0 %308  ;;  %v422_v35 = vperm.slane %v312_v15, %v1490_v10 }
  0xe9   : > { %v421_v62 = vperm.slane %v309_v34, %v1490_v10  ;;  %v337_v10 = vld [vmem:[%s1741_s1] sm:$0xff] }
  0xeb   : > { %v457_v58 = vsel %vm441_vm6, %v421_v62, %v456_v39 }
  0xec   : > { %v458_v41 = vsel %vm443_vm7, %v422_v35, %v457_v58 }
  0xed   : > { %496 = vmatpush.msra.mxu0 %v458_v41  ;;  %1006 = vmatpush.msra.mxu1 %v458_v41 }
  0xee   : > { %1007 = vmatpush.msra.mxu2 %v458_v41  ;;  %1008 = vmatpush.msra.mxu3 %v458_v41 }
  0xef   : > { %497 = vmatpush.msra.mxu0 %v451_v59  ;;  %1009 = vmatpush.msra.mxu1 %v451_v59 }
  0xf0   : > { %1010 = vmatpush.msra.mxu2 %v451_v59  ;;  %1011 = vmatpush.msra.mxu3 %v451_v59 }
  0xf1   : > { %498 = vmatpush.msra.mxu0 %v1507_v52  ;;  %1012 = vmatpush.msra.mxu1 %v1507_v52 }
  0xf2   : > { %1013 = vmatpush.msra.mxu2 %v1507_v52  ;;  %1014 = vmatpush.msra.mxu3 %v1507_v52 }
  0xf3   : > { %988 = vmatmul.msk.f32.vlgmr.msra.gmra.mxu0 %vm470_vm8, %v337_v10  ;;  %991 = vmatmul.msk.f32.vlgmr.msra.gmra.mxu3 %vm470_vm8, %v340_v5 }
  0xf4   : > { %989 = vmatmul.msk.f32.vlgmr.msra.gmra.mxu1 %vm470_vm8, %v338_v57  ;;  %990 = vmatmul.msk.f32.vlgmr.msra.gmra.mxu2 %vm470_vm8, %v339_v51 }
 0x101   : > { %v348_v3 = vpop.permute.xlu2 %347 }
 0x119   : > { %v353_v22 = vpop.permute.xlu0 %352 }
 0x11b   : > { %v358_v52 = vpop.permute.xlu1 %357 }
 0x12c   : > { %v363_v39 = vpop.permute.xlu2 %362 }
 0x170   : > { %v500_v4 = vpop.f32.mrf.mxu0 }
 0x171   : > { %v501_v28 = vadd.f32 %v500_v4, %v348_v3  ;;  %v503_v16 = vpop.f32.mrf.mxu1 }
 0x172   : > { %v504_v21 = vadd.f32 %v503_v16, %v353_v22 }
 0x173   : > { %v992_v53 = vmul.f32 -1.442695, %v501_v28 }
 0x174   : > { %v993_v29 = vmul.f32 -1.442695, %v504_v21 }
 0x175   : > { %1088 = vpow2.f32 %v992_v53 }
 0x176   : > { %1090 = vpow2.f32 %v993_v29  ;;  %v509_v62 = vpop.f32.mrf.mxu3 }
 0x177   : > { %v506_v63 = vpop.f32.mrf.mxu2  ;;  %v510_v47 = vadd.f32 %v509_v62, %v363_v39 }
 0x178   : > { %v507_v23 = vadd.f32 %v506_v63, %v358_v52 }
 0x179   : > { %v995_v53 = vmul.f32 -1.442695, %v510_v47 }
 0x17a   : > { %v994_v34 = vmul.f32 -1.442695, %v507_v23 }
 0x17b   : > { %v1089_v27 = vpop.eup %1088 }
 0x17c   : > { %v1091_v15 = vpop.eup %1090  ;;  %v524_v17 = vadd.f32 1.0, %v1089_v27 }
 0x17d   : > { %v525_v9 = vadd.f32 1.0, %v1091_v15 }
 0x17e   : > { %1092 = vrcp.f32 %v524_v17  ;;  %v539_v41 = vand.u32 2147483648, %v524_v17  ;;  %v537_v5 = vand.u32 2147483647, %v524_v17  ;;  %vm533_vm12 = vweird.f32 %v524_v17 }
 0x17f   : > { %1094 = vrcp.f32 %v525_v9  ;;  %vm548_vm10 = vweird.f32 %v525_v9  ;;  %v554_v51 = vand.u32 2147483648, %v525_v9  ;;  %v552_v3 = vand.u32 2147483647, %v525_v9 }
 0x180   : > { %1096 = vpow2.f32 %v994_v34  ;;  %v540_v4 = vor.u32 1.1754944e-38, %v539_v41  ;;  %vm538_vm15 = vcmp.eq.f32.partialorder %v537_v5, 8.507059e+37 }
 0x181   : > { %v555_v29 = vor.u32 1.1754944e-38, %v554_v51  ;;  %vm553_vm1 = vcmp.eq.f32.partialorder %v552_v3, 8.507059e+37 }
 0x184   : > { %v1093_v35 = vpop.eup %1092 }
 0x185   : > { %v1095_v40 = vpop.eup %1094  ;;  %v529_v45 = vmul.f32 %v1093_v35, %v524_v17  ;;  %vm534_vm9 = vweird.f32 %v1093_v35 }
 0x186   : > { %v544_v46 = vmul.f32 %v1095_v40, %v525_v9  ;;  %v1097_v33 = vpop.eup %1096  ;;  %vm549_vm11 = vweird.f32 %v1095_v40  ;;  %vm535_vm13 = vmor %vm533_vm12, %vm534_vm9 }
 0x187   : > { %v530_v58 = vsub.f32 1.0, %v529_v45  ;;  %v526_v11 = vadd.f32 1.0, %v1097_v33  ;;  %vm550_vm14 = vmor %vm548_vm10, %vm549_vm11 }
 0x188   : > { %v545_v59 = vsub.f32 1.0, %v544_v46 }
 0x189   : > { %v531_v10 = vmul.f32 %v1093_v35, %v530_v58  ;;  %1098 = vrcp.f32 %v526_v11  ;;  %vm563_vm2 = vweird.f32 %v526_v11  ;;  %v569_v47 = vand.u32 2147483648, %v526_v11 }
 0x18a   : > { %v546_v57 = vmul.f32 %v1095_v40, %v545_v59  ;;  %1100 = vpow2.f32 %v995_v53 }
 0x18b   : > { %v532_v22 = vadd.f32 %v1093_v35, %v531_v10  ;;  %v567_v10 = vand.u32 2147483647, %v526_v11 }
 0x18c   : > { %v547_v28 = vadd.f32 %v1095_v40, %v546_v57  ;;  %v570_v57 = vor.u32 1.1754944e-38, %v569_v47 }
 0x18d   : > { %v536_v16 = vsel %vm535_vm13, %v1093_v35, %v532_v22  ;;  %vm568_vm5 = vcmp.eq.f32.partialorder %v567_v10, 8.507059e+37 }
 0x18e   : > { %v541_v21 = vsel %vm538_vm15, %v540_v4, %v536_v16  ;;  %v551_v52 = vsel %vm550_vm14, %v1095_v40, %v547_v28 }
 0x18f   : > { %v616_v63 = vperm.slane %v541_v21, 4  ;;  %v595_v23 = vperm.slane %v541_v21, 1  ;;  %v588_v27 = vperm.slane %v541_v21, 0  ;;  %v556_v15 = vsel %vm553_vm1, %v555_v29, %v551_v52  ;;  %v1099_v17 = vpop.eup %1098 }
 0x190   : > { %v651_v9 = vperm.slane %v556_v15, 1  ;;  %v559_v34 = vmul.f32 %v1099_v17, %v526_v11  ;;  %v609_v45 = vperm.slane %v541_v21, 3  ;;  %v602_v35 = vperm.slane %v541_v21, 2  ;;  %v1101_v62 = vpop.eup %1100 }
 0x191   : > { %621 = vperm.xlu0 %1087, %v616_v63   ;;  %600 = vperm.xlu1 %1086, %v595_v23   ;;  %v527_v40 = vadd.f32 1.0, %v1101_v62  ;;  %v630_v39 = vperm.slane %v541_v21, 6  ;;  %v672_v58 = vperm.slane %v556_v15, 4  ;;  %v623_v41 = vperm.slane %v541_v21, 5 }
 0x192   : > { %593 = vperm.xlu2 %1085, %v588_v27   ;;  %v560_v46 = vsub.f32 1.0, %v559_v34  ;;  %vm564_vm3 = vweird.f32 %v1099_v17  ;;  %v693_v22 = vperm.slane %v556_v15, 7  ;;  %v644_v3 = vperm.slane %v556_v15, 0 }
 0x193   : > { %1102 = vrcp.f32 %v527_v40  ;;  %vm565_vm4 = vmor %vm563_vm2, %vm564_vm3  ;;  %v637_v4 = vperm.slane %v541_v21, 7  ;;  %v665_v52 = vperm.slane %v556_v15, 3  ;;  %v658_v63 = vperm.slane %v556_v15, 2 }
 0x194   : > { %v561_v33 = vmul.f32 %v1099_v17, %v560_v46  ;;  %v584_v27 = vand.u32 2147483648, %v527_v40  ;;  %vm578_vm7 = vweird.f32 %v527_v40  ;;  %v686_v21 = vperm.slane %v556_v15, 6 }
 0x195   : > { %v679_v34 = vperm.slane %v556_v15, 5 }
 0x196   : > { %v562_v59 = vadd.f32 %v1099_v17, %v561_v33 }
 0x198   : > { %v566_v51 = vsel %vm565_vm4, %v1099_v17, %v562_v59  ;;  %v582_v17 = vand.u32 2147483647, %v527_v40 }
 0x199   : > { %614 = vperm.xlu1 %1086, %v609_v45   ;;  %656 = vperm.xlu0 %1087, %v651_v9   ;;  %v1103_v5 = vpop.eup %1102  ;;  %v571_v16 = vsel %vm568_vm5, %v570_v57, %v566_v51 }
 0x19a   : > { %607 = vperm.xlu2 %1085, %v602_v35   ;;  %v574_v28 = vmul.f32 %v1103_v5, %v527_v40  ;;  %v714_v29 = vperm.slane %v571_v16, 2  ;;  %vm579_vm6 = vweird.f32 %v1103_v5  ;;  %v735_v9 = vperm.slane %v571_v16, 5 }
 0x19b   : > { %vm580_vm8 = vmor %vm578_vm7, %vm579_vm6  ;;  %v585_v35 = vor.u32 1.1754944e-38, %v584_v27  ;;  %vm583_vm9 = vcmp.eq.f32.partialorder %v582_v17, 8.507059e+37  ;;  %v707_v33 = vperm.slane %v571_v16, 1  ;;  %v721_v40 = vperm.slane %v571_v16, 3 }
 0x19c   : > { %v575_v53 = vsub.f32 1.0, %v574_v28  ;;  %v749_v47 = vperm.slane %v571_v16, 7  ;;  %v742_v59 = vperm.slane %v571_v16, 6 }
 0x19e   : > { %v576_v23 = vmul.f32 %v1103_v5, %v575_v53 }
 0x1a0   : > { %v577_v11 = vadd.f32 %v1103_v5, %v576_v23 }
 0x1a1   : > { %635 = vperm.xlu1 %1086, %v630_v39   ;;  %677 = vperm.xlu0 %1087, %v672_v58   ;;  %v700_v39 = vperm.slane %v571_v16, 0 }
 0x1a2   : > { %628 = vperm.xlu2 %1085, %v623_v41   ;;  %v581_v45 = vsel %vm580_vm8, %v1103_v5, %v577_v11  ;;  %v728_v41 = vperm.slane %v571_v16, 4 }
 0x1a3   : > { %v586_v62 = vsel %vm583_vm9, %v585_v35, %v581_v45 }
 0x1a4   : > { %v756_v46 = vperm.slane %v586_v62, 0  ;;  %v777_v58 = vperm.slane %v586_v62, 3  ;;  %v798_v15 = vperm.slane %v586_v62, 6  ;;  %v770_v10 = vperm.slane %v586_v62, 2 }
 0x1a5   : > { %v763_v5 = vperm.slane %v586_v62, 1  ;;  %v791_v57 = vperm.slane %v586_v62, 5  ;;  %v784_v51 = vperm.slane %v586_v62, 4 }
 0x1a9   : > { %698 = vperm.xlu0 %1087, %v693_v22   ;;  %649 = vperm.xlu1 %1086, %v644_v3   ;;  %v805_v22 = vperm.slane %v586_v62, 7 }
 0x1aa   : > { %642 = vperm.xlu2 %1085, %v637_v4  }
 0x1b1   : > { %719 = vperm.xlu0 %1087, %v714_v29   ;;  %670 = vperm.xlu1 %1086, %v665_v52  }
 0x1b2   : > { %663 = vperm.xlu2 %1085, %v658_v63  }
 0x1b9   : > { %740 = vperm.xlu0 %1087, %v735_v9   ;;  %691 = vperm.xlu1 %1086, %v686_v21  }
 0x1ba   : > { %684 = vperm.xlu2 %1085, %v679_v34  }
 0x1c1   : > { %761 = vperm.xlu0 %1087, %v756_v46   ;;  %712 = vperm.xlu1 %1086, %v707_v33  }
 0x1c2   : > { %705 = vperm.xlu2 %1085, %v700_v39  }
 0x1c9   : > { %782 = vperm.xlu0 %1087, %v777_v58   ;;  %733 = vperm.xlu1 %1086, %v728_v41  }
 0x1ca   : > { %726 = vperm.xlu2 %1085, %v721_v40  }
 0x1d1   : > { %803 = vperm.xlu0 %1087, %v798_v15   ;;  %754 = vperm.xlu1 %1086, %v749_v47  }
 0x1d2   : > { %747 = vperm.xlu2 %1085, %v742_v59  }
 0x1d9   : > { %775 = vperm.xlu1 %1086, %v770_v10  }
 0x1da   : > { %768 = vperm.xlu2 %1085, %v763_v5  }
 0x1e1   : > { %796 = vperm.xlu1 %1086, %v791_v57  }
 0x1e2   : > { %789 = vperm.xlu2 %1085, %v784_v51  }
 0x1ea   : > { %810 = vperm.xlu2 %1085, %v805_v22  }
 0x1ec   : > { %v594_v3 = vpop.permute.xlu2 %593 }
 0x1ed   : > { %v812_v4 = vmul.f32 %v594_v3, %v1336_v2 }
 0x1ef   : > { %844 = vst.msk [vmem:[%s1604_s28] sm:$0xf] %vm240_vm0, %v812_v4 }
 0x1f4   : > { %v608_v28 = vpop.permute.xlu2 %607 }
 0x1f5   : > { %v814_v16 = vmul.f32 %v608_v28, %v1333_v1 }
 0x1f7   : > { %846 = vst.msk [vmem:[%s1604_s28 + $0x8] sm:$0xf] %vm240_vm0, %v814_v16 }
 0x1fc   : > { %v629_v53 = vpop.permute.xlu2 %628 }
 0x1fd   : > { %v817_v29 = vmul.f32 %v629_v53, %v1345_v6 }
 0x1ff   : > { %849 = vst.msk [vmem:[%s1604_s28 + $0x14] sm:$0xf] %vm240_vm0, %v817_v29 }
 0x203   : > { %v601_v2 = vpop.permute.xlu1 %600  ;;  %v622_v52 = vpop.permute.xlu0 %621 }
 0x204   : > { %v813_v63 = vmul.f32 %v601_v2, %v1351_v8  ;;  %v643_v23 = vpop.permute.xlu2 %642  ;;  %v816_v11 = vmul.f32 %v622_v52, %v1330_v0 }
 0x205   : > { %v819_v27 = vmul.f32 %v643_v23, %v1363_v13 }
 0x206   : > { %845 = vst.msk [vmem:[%s1604_s28 + $0x4] sm:$0xf] %vm240_vm0, %v813_v63 }
 0x207   : > { %851 = vst.msk [vmem:[%s1604_s28 + $0x1c] sm:$0xf] %vm240_vm0, %v819_v27 }
 0x208   : > { %848 = vst.msk [vmem:[%s1604_s28 + $0x10] sm:$0xf] %vm240_vm0, %v816_v11 }
 0x20b   : > { %v615_v1 = vpop.permute.xlu1 %614  ;;  %v657_v6 = vpop.permute.xlu0 %656 }
 0x20c   : > { %v815_v17 = vmul.f32 %v615_v1, %v1348_v7  ;;  %v664_v9 = vpop.permute.xlu2 %663  ;;  %v821_v8 = vmul.f32 %v657_v6, %v1381_v20 }
 0x20d   : > { %v822_v0 = vmul.f32 %v664_v9, %v1378_v19 }
 0x20e   : > { %847 = vst.msk [vmem:[%s1604_s28 + $0xc] sm:$0xf] %vm240_vm0, %v815_v17 }
 0x20f   : > { %854 = vst.msk [vmem:[%s1604_s28 + $0x28] sm:$0xf] %vm240_vm0, %v822_v0 }
 0x210   : > { %853 = vst.msk [vmem:[%s1604_s28 + $0x24] sm:$0xf] %vm240_vm0, %v821_v8 }
 0x213   : > { %v636_v13 = vpop.permute.xlu1 %635  ;;  %v678_v21 = vpop.permute.xlu0 %677 }
 0x214   : > { %v818_v34 = vmul.f32 %v636_v13, %v1366_v14  ;;  %v685_v45 = vpop.permute.xlu2 %684  ;;  %v824_v7 = vmul.f32 %v678_v21, %v1396_v26 }
 0x215   : > { %v825_v20 = vmul.f32 %v685_v45, %v1393_v25 }
 0x216   : > { %850 = vst.msk [vmem:[%s1604_s28 + $0x18] sm:$0xf] %vm240_vm0, %v818_v34 }
 0x217   : > { %857 = vst.msk [vmem:[%s1604_s28 + $0x34] sm:$0xf] %vm240_vm0, %v825_v20 }
 0x218   : > { %856 = vst.msk [vmem:[%s1604_s28 + $0x30] sm:$0xf] %vm240_vm0, %v824_v7 }
 0x21b   : > { %v650_v19 = vpop.permute.xlu1 %649  ;;  %v699_v35 = vpop.permute.xlu0 %698 }
 0x21c   : > { %v706_v62 = vpop.permute.xlu2 %705  ;;  %v820_v46 = vmul.f32 %v650_v19, %v1360_v12  ;;  %v827_v14 = vmul.f32 %v699_v35, %v1411_v32 }
 0x21d   : > { %v828_v26 = vmul.f32 %v706_v62, %v1408_v31 }
 0x21e   : > { %852 = vst.msk [vmem:[%s1604_s28 + $0x20] sm:$0xf] %vm240_vm0, %v820_v46 }
 0x21f   : > { %860 = vst.msk [vmem:[%s1604_s28 + $0x40] sm:$0xf] %vm240_vm0, %v828_v26 }
 0x220   : > { %859 = vst.msk [vmem:[%s1604_s28 + $0x3c] sm:$0xf] %vm240_vm0, %v827_v14 }
 0x223   : > { %v671_v25 = vpop.permute.xlu1 %670  ;;  %v720_v33 = vpop.permute.xlu0 %719 }
 0x224   : > { %v727_v39 = vpop.permute.xlu2 %726  ;;  %v823_v58 = vmul.f32 %v671_v25, %v1375_v18  ;;  %v830_v12 = vmul.f32 %v720_v33, %v1426_v38 }
 0x225   : > { %v831_v32 = vmul.f32 %v727_v39, %v1423_v37 }
 0x226   : > { %855 = vst.msk [vmem:[%s1604_s28 + $0x2c] sm:$0xf] %vm240_vm0, %v823_v58 }
 0x227   : > { %863 = vst.msk [vmem:[%s1604_s28 + $0x4c] sm:$0xf] %vm240_vm0, %v831_v32 }
 0x228   : > { %862 = vst.msk [vmem:[%s1604_s28 + $0x48] sm:$0xf] %vm240_vm0, %v830_v12 }
 0x22b   : > { %v692_v31 = vpop.permute.xlu1 %691  ;;  %v741_v41 = vpop.permute.xlu0 %740 }
 0x22c   : > { %v748_v40 = vpop.permute.xlu2 %747  ;;  %v826_v15 = vmul.f32 %v692_v31, %v1390_v24  ;;  %v833_v18 = vmul.f32 %v741_v41, %v1465_v54 }
 0x22d   : > { %v834_v38 = vmul.f32 %v748_v40, %v1483_v61 }
 0x22e   : > { %858 = vst.msk [vmem:[%s1604_s28 + $0x38] sm:$0xf] %vm240_vm0, %v826_v15 }
 0x22f   : > { %866 = vst.msk [vmem:[%s1604_s28 + $0x58] sm:$0xf] %vm240_vm0, %v834_v38 }
 0x230   : > { %865 = vst.msk [vmem:[%s1604_s28 + $0x54] sm:$0xf] %vm240_vm0, %v833_v18 }
 0x233   : > { %v713_v37 = vpop.permute.xlu1 %712  ;;  %v762_v47 = vpop.permute.xlu0 %761 }
 0x234   : > { %v769_v59 = vpop.permute.xlu2 %768  ;;  %v829_v10 = vmul.f32 %v713_v37, %v1405_v30  ;;  %v836_v24 = vmul.f32 %v762_v47, %v1420_v36 }
 0x235   : > { %v837_v54 = vmul.f32 %v769_v59, %v1441_v44 }
 0x236   : > { %861 = vst.msk [vmem:[%s1604_s28 + $0x44] sm:$0xf] %vm240_vm0, %v829_v10 }
 0x237   : > { %869 = vst.msk [vmem:[%s1604_s28 + $0x64] sm:$0xf] %vm240_vm0, %v837_v54 }
 0x238   : > { %868 = vst.msk [vmem:[%s1604_s28 + $0x60] sm:$0xf] %vm240_vm0, %v836_v24 }
 0x23b   : > { %v734_v61 = vpop.permute.xlu1 %733  ;;  %v783_v5 = vpop.permute.xlu0 %782 }
 0x23c   : > { %v790_v57 = vpop.permute.xlu2 %789  ;;  %v832_v51 = vmul.f32 %v734_v61, %v1450_v48  ;;  %v839_v30 = vmul.f32 %v783_v5, %v1435_v42 }
 0x23d   : > { %v840_v36 = vmul.f32 %v790_v57, %v1456_v50 }
 0x23e   : > { %864 = vst.msk [vmem:[%s1604_s28 + $0x50] sm:$0xf] %vm240_vm0, %v832_v51 }
 0x23f   : > { %872 = vst.msk [vmem:[%s1604_s28 + $0x70] sm:$0xf] %vm240_vm0, %v840_v36 }
 0x240   : > { %871 = vst.msk [vmem:[%s1604_s28 + $0x6c] sm:$0xf] %vm240_vm0, %v839_v30 }
 0x243   : > { %v755_v44 = vpop.permute.xlu1 %754  ;;  %v804_v22 = vpop.permute.xlu0 %803 }
 0x244   : > { %v811_v3 = vpop.permute.xlu2 %810  ;;  %v835_v4 = vmul.f32 %v755_v44, %v1480_v60  ;;  %v842_v28 = vmul.f32 %v804_v22, %v1471_v56 }
 0x245   : > { %v843_v42 = vmul.f32 %v811_v3, %v1468_v55 }
 0x246   : > { %867 = vst.msk [vmem:[%s1604_s28 + $0x5c] sm:$0xf] %vm240_vm0, %v835_v4 }
 0x247   : > { %875 = vst.msk [vmem:[%s1604_s28 + $0x7c] sm:$0xf] %vm240_vm0, %v843_v42 }
 0x248   : > { %874 = vst.msk [vmem:[%s1604_s28 + $0x78] sm:$0xf] %vm240_vm0, %v842_v28 }
 0x24b   : > { %v776_v48 = vpop.permute.xlu1 %775 }
 0x24c   : > { %v838_v50 = vmul.f32 %v776_v48, %v1438_v43 }
 0x24e   : > { %870 = vst.msk [vmem:[%s1604_s28 + $0x68] sm:$0xf] %vm240_vm0, %v838_v50 }
 0x253   : > { %v797_v55 = vpop.permute.xlu1 %796 }
 0x254   : > { %v841_v56 = vmul.f32 %v797_v55, %v1453_v49 }
 0x256   : > { %873 = vst.msk [vmem:[%s1604_s28 + $0x74] sm:$0xf] %vm240_vm0, %v841_v56 }
 0x257   : > { %1161 = shalt.err (!%p1158_p13)
}
 0x258   : > { %s1221_s19 = smov 64   ;;  %s1222_s22 = smov 4  }
 0x259   : > { %1017 = dma.vmem_to_hbm [thread:$0]  (%p1294_p9), %s891_s5, 2048, %s893_s6, %s877_s15, %s1221_s19, %s1221_s19, %s1222_s22  }
 0x25a PF: > { %s907_s24 = sand.u32 1, %s1196_s12   ;;  %p1024_p0 = pnand %p981_p12, %p1301_p11 }
 0x25b   : > { %s908_s28 = scalar_lea.sflag [#allocation4], %s907_s24 }
 0x25c   : > { %p1025_p1 = pneg %p1024_p0 }
 0x25e   : > { %1191 = dma.done.wait (%p1025_p1), %s908_s28, 2048  }
 0x25f   : > { %1193 = vsyncadd (%p1025_p1), %s908_s28, 4294965248  ;;  %s19_s17 = sadd.s32 1, %s1216_s17   ;;  %s1748_s12 = smov %s1200_s13 }
 0x260   : > { %p16_p2 = scmp.ge.s32.totalorder %s19_s17, 4   ;;  %s1749_s13 = smov %s1204_s14 }
 0x261   : > { %s1750_s14 = smov %s1299_s26  ;;  %s1751_s15 = smov %s1212_s16 }
 0x262   : > { %s1752_s16 = smov %s1754_s20  ;;  %18 = sbr.rel (!%p16_p2) target bundleno = 6 (0x6), region = 77 }
 0x267   :  { %914 = vsyncpa [#allocation3], 1 }
 0x268   :  { %916 = vsyncpa [#allocation3 + $0x1], 1 }
 0x269   :  { %917 = vsyncpa [#allocation4], 1 }
 0x26a   :  { %919 = vsyncpa [#allocation4 + $0x1], 1 }

</bundles_post_ra>
